<compile_context>
chip_gen: v6e
topology: v6e:2x2x1
jax: 0.10.0
libtpu: 0.0.40
codegen_flags: <defaults>
</compile_context>

<pallas_src>
import jax
import jax.numpy as jnp
from jax import lax
from jax.experimental import pallas as pl
from jax.experimental.pallas import tpu as pltpu


def _decoder_linear_kernel(x_ref, w_ref, b_ref, o_ref):
    x = x_ref[0]          # (TN, D)  token tile
    w = w_ref[...]        # (D, C)   resident weight
    b = b_ref[...]        # (C, 1)   resident bias (column vector)
    # Contract D of w with D of x -> (C, TN): classes on sublanes, tokens on
    # lanes, so the store is lane-dense even when C << 128.
    acc = lax.dot_general(
        w, x,
        dimension_numbers=(((0,), (1,)), ((), ())),
        preferred_element_type=jnp.float32,
    )                                                   # (C, TN) f32
    acc = acc + b.astype(jnp.float32)                   # broadcast along tokens
    o_ref[0] = acc.astype(o_ref.dtype)                  # (C, TN)


def _pick_token_tile(n, max_tile=512):
    """Largest legal token tile: full N if small, else a multiple of 128."""
    if n <= max_tile:
        return n
    return max_tile  # max_tile is a multiple of 128; ragged tail is masked


def decoder_linear_head(x, weight, bias, *, max_token_tile=512):
    """x: (B, N, D), weight: (D, C), bias: (C,) -> (B, C, N) (tokens lane-dense)."""
    B, N, D = x.shape
    C = weight.shape[1]
    tn = _pick_token_tile(N, max_token_tile)
    bias_col = bias.reshape(C, 1)

    itemsize = jnp.dtype(x.dtype).itemsize
    cost = pl.CostEstimate(
        flops=2 * B * N * D * C,
        transcendentals=0,
        bytes_accessed=(B * N * D * itemsize            # read x
                        + D * C * jnp.dtype(weight.dtype).itemsize
                        + C * jnp.dtype(bias.dtype).itemsize
                        + B * N * C * itemsize),        # write out
    )

    return pl.pallas_call(
        _decoder_linear_kernel,
        out_shape=jax.ShapeDtypeStruct((B, C, N), x.dtype),
        grid_spec=pl.GridSpec(
            grid=(B, pl.cdiv(N, tn)),
            in_specs=[
                pl.BlockSpec((1, tn, D), lambda b, j: (b, j, 0)),   # x tile
                pl.BlockSpec((D, C), lambda b, j: (0, 0)),          # weight (resident)
                pl.BlockSpec((C, 1), lambda b, j: (0, 0)),          # bias   (resident)
            ],
            out_specs=pl.BlockSpec((1, C, tn), lambda b, j: (b, 0, j)),
        ),
        compiler_params=pltpu.CompilerParams(
            dimension_semantics=("parallel", "parallel")),
        cost_estimate=cost,
    )(x, weight, bias_col)


def decoder_linear_forward(x, img_height, patch_size, weight, bias):
    """x: (B, N, embed_dim) -> (B, num_classes, h, w), h = img_height // patch_size."""
    B, N, _ = x.shape
    C = weight.shape[1]
    out_bcn = decoder_linear_head(x, weight, bias)       # (B, C, N)
    num_patch_h = img_height // patch_size
    num_patch_w = N // num_patch_h
    # 'b (h w) c -> b c h w' is now a free reshape: the kernel already emitted
    # channels-major, tokens-minor layout.  No HBM transpose.
    return out_bcn.reshape(B, C, num_patch_h, num_patch_w)


if __name__ == "__main__":
    # Small shapes consistent with the module:
    #   embed_dim=32, patch_size=4, img_height=img_width=16
    #   -> num_patch_h = num_patch_w = 4, N = 16 tokens, num_classes=8, B=2
    B, embed_dim, patch_size, img_height, num_classes = 2, 32, 4, 16, 8
    num_patch_h = img_height // patch_size
    N = num_patch_h * num_patch_h

    key = jax.random.PRNGKey(0)
    kx, kw = jax.random.split(key)
    x = jax.random.normal(kx, (B, N, embed_dim), dtype=jnp.float32)

    # Deterministic parameter init matching init_weights:
    #   nn.Linear weight ~ trunc_normal(std=0.02), bias = 0
    # (plain normal * 0.02 — truncation at ±2 is negligible at this std)
    weight = (jax.random.normal(kw, (embed_dim, num_classes), dtype=jnp.float32)
              * 0.02)
    bias = jnp.zeros((num_classes,), dtype=jnp.float32)

    out = decoder_linear_forward(x, img_height, patch_size, weight, bias)
    out = jax.block_until_ready(out)

    # Reference check in plain JAX.
    ref = jnp.einsum("bnd,dc->bnc", x, weight) + bias
    ref = jnp.transpose(
        ref.reshape(B, num_patch_h, N // num_patch_h, num_classes),
        (0, 3, 1, 2))
    assert out.shape == (B, num_classes, num_patch_h, N // num_patch_h), out.shape
    assert jnp.allclose(out, ref, atol=1e-5, rtol=1e-5)

    print("KERNEL_OK")
</pallas_src>

<mosaic_0001>
module attributes {stable_mosaic.version = 11 : i64} {
  func.func @_decoder_linear_kernel(%arg0: i32, %arg1: i32, %arg2: memref<1x16x32xf32, #tpu.memory_space<vmem>>, %arg3: memref<32x8xf32, #tpu.memory_space<vmem>>, %arg4: memref<8x1xf32, #tpu.memory_space<vmem>>, %arg5: memref<1x8x16xf32, #tpu.memory_space<vmem>>) attributes {dimension_semantics = [#tpu.dimension_semantics<parallel>, #tpu.dimension_semantics<parallel>], iteration_bounds = array<i64: 2, 1>, scalar_prefetch = 0 : i64, scratch_operands = 0 : i64, tpu.core_type = #tpu.core_type<tc>, window_params = [{transform_indices = @transform_0, window_bounds = array<i64: 1, 16, 32>}, {pipeline_mode = #tpu.pipeline_mode<synchronous>, transform_indices = @transform_1, window_bounds = array<i64: 32, 8>}, {pipeline_mode = #tpu.pipeline_mode<synchronous>, transform_indices = @transform_2, window_bounds = array<i64: 8, 1>}, {transform_indices = @transform_3, window_bounds = array<i64: 1, 8, 16>}]} {
    %c0 = arith.constant 0 : index
    %c0_0 = arith.constant 0 : index
    %c0_1 = arith.constant 0 : index
    %0 = vector.load %arg2[%c0, %c0_0, %c0_1] : memref<1x16x32xf32, #tpu.memory_space<vmem>>, vector<1x16x32xf32>
    %1 = vector.shape_cast %0 : vector<1x16x32xf32> to vector<16x32xf32>
    %c0_2 = arith.constant 0 : index
    %c0_3 = arith.constant 0 : index
    %2 = vector.load %arg3[%c0_2, %c0_3] : memref<32x8xf32, #tpu.memory_space<vmem>>, vector<32x8xf32>
    %c0_4 = arith.constant 0 : index
    %c0_5 = arith.constant 0 : index
    %3 = vector.load %arg4[%c0_4, %c0_5] : memref<8x1xf32, #tpu.memory_space<vmem>>, vector<8x1xf32>
    %cst = arith.constant dense<0.000000e+00> : vector<8x16xf32>
    %4 = tpu.matmul %2, %1, %cst {dimension_numbers = #tpu.dot_dimension_numbers<[0], [1], [1], [0], [0, 1, 1, 0], [], []>} : vector<32x8xf32>, vector<16x32xf32>, vector<8x16xf32> -> vector<8x16xf32>
    %5 = vector.broadcast %3 : vector<8x1xf32> to vector<8x16xf32>
    %6 = arith.addf %4, %5 : vector<8x16xf32>
    %c0_6 = arith.constant 0 : index
    %c0_7 = arith.constant 0 : index
    %c0_8 = arith.constant 0 : index
    %7 = vector.load %arg5[%c0_6, %c0_7, %c0_8] : memref<1x8x16xf32, #tpu.memory_space<vmem>>, vector<1x8x16xf32>
    %8 = vector.shape_cast %7 : vector<1x8x16xf32> to vector<8x16xf32>
    %9 = vector.shape_cast %6 : vector<8x16xf32> to vector<1x8x16xf32>
    tpu.vector_store %arg5[%c0_6, %c0_7, %c0_8], %9 {strides = array<i32>} : memref<1x8x16xf32, #tpu.memory_space<vmem>>, vector<1x8x16xf32>,
    return
  }
  func.func @transform_0(%arg0: i32, %arg1: i32) -> (i32, i32, i32) {
    %c0_i32 = arith.constant 0 : i32
    %c0_i32_0 = arith.constant 0 : i32
    return %arg0, %arg1, %c0_i32 : i32, i32, i32
  }
  func.func @transform_1(%arg0: i32, %arg1: i32) -> (i32, i32) {
    %c0_i32 = arith.constant 0 : i32
    %c0_i32_0 = arith.constant 0 : i32
    %c0_i32_1 = arith.constant 0 : i32
    return %c0_i32, %c0_i32_0 : i32, i32
  }
  func.func @transform_2(%arg0: i32, %arg1: i32) -> (i32, i32) {
    %c0_i32 = arith.constant 0 : i32
    %c0_i32_0 = arith.constant 0 : i32
    %c0_i32_1 = arith.constant 0 : i32
    return %c0_i32, %c0_i32_0 : i32, i32
  }
  func.func @transform_3(%arg0: i32, %arg1: i32) -> (i32, i32, i32) {
    %c0_i32 = arith.constant 0 : i32
    %c0_i32_0 = arith.constant 0 : i32
    return %arg0, %c0_i32, %arg1 : i32, i32, i32
  }
}

</mosaic_0001>

<bundles_post_ra>
// kernel: tpu_custom_call.1
= control target key start
LH: loop header
LB: loop body
LE: loop exit
PB: predicated region body
PF: predicated region fallthrough
CT: control target
= control target key end

     0   :  { %8 = vsyncpa [#allocation3], 0  ;;  %s722_s0 = inlined_call_operand.vmem [shape: f32[2,16,32], index: 0, kind: input, shape index: {}]   ;;  %s723_s1 = inlined_call_operand.vmem [shape: f32[32,8], index: 1, kind: input, shape index: {}]   ;;  %s724_s2 = inlined_call_operand.vmem [shape: f32[8,1], index: 2, kind: input, shape index: {}]   ;;  %s725_s3 = inlined_call_operand.hbm [shape: f32[2,8,16], index: 3, kind: output, shape index: {}]  }
   0x1   :  { %10 = vsyncpa [#allocation3 + $0x1], 0  ;;  %s602_s12 = smov 0   ;;  %s604_s13 = smov 0  }
   0x2   :  { %s606_s14 = smov 0   ;;  %s608_s15 = smov 0  }
   0x3   :  { %s610_s16 = smov 0   ;;  %s612_s17 = smov 0  }
   0x4 LB: > { %s414_s18 = sadd.s32 4294967295, %s576_s17   ;;  %s415_s19 = sadd.s32 4294967294, %s576_s17   ;;  %s576_s17 = sphi %s612_s17, %s16_s17   ;;  %s572_s16 = sphi %s610_s16, %s732_s16   ;;  %s568_s15 = sphi %s608_s15, %s731_s15   ;;  %s564_s14 = sphi %s606_s14, %s730_s14   ;;  %s560_s13 = sphi %s604_s13, %s729_s13   ;;  %s556_s12 = sphi %s602_s12, %s728_s12  }
   0x5   : > { %s28_s20 = sadd.s32 1, %s572_s16  ;;  %s107_s21 = sadd.s32 1, %s564_s14 }
   0x6   : > { %p30_p0 = scmp.ge.s32.totalorder %s28_s20, 2  ;;  %p117_p1 = scmp.ne.s32.totalorder %s564_s14, %s560_s13 }
   0x7   : > { %p118_p2 = scmp.eq.s32.totalorder %s414_s18, 1  ;;  %p123_p3 = scmp.ne.s32.totalorder %s560_s13, %s556_s12 }
   0x8   : > { %s734_s20 = smov (%p30_p0, %s28_s20), 0  ;;  %p124_p5 = scmp.eq.s32.totalorder %s415_s19, 1 }
   0x9   : > { %p642_p4 = por %p118_p2, %p117_p1  ;;  %s102_s23 = ssub.s32 %s572_s16, %s734_s20 }
   0xa   : > { %p418_p6 = scmp.ge.s32.totalorder %s576_s17, 1  ;;  %p105_p7 = scmp.eq.s32.totalorder %s102_s23, 0 }
   0xb   : > { %p649_p8 = por %p124_p5, %p123_p3  ;;  %p161_p9 = scmp.lt.s32.totalorder %s576_s17, 3 }
   0xc   : > { %s655_s25 = scalar_select %p105_p7, %s564_s14, %s107_s21  }
   0xd   : > { %p162_p10 = pnand %p418_p6, %p161_p9 }
   0xe   : > { %p190_p11 = scmp.lt.s32.totalorder (!%p162_p10), %s568_s15, 1  ;;  %s186_s21 = sand.u32 (!%p162_p10), 1, %s560_s13  }
   0xf   : > { %165 = sbr.rel (%p162_p10) target bundleno = 354 (0x162), region = 32  ;;  %s419_s23 = sshll.u32 (!%p162_p10), %s186_s21, 3 }
  0x10   : > { %s426_s26 = sshll.u32 (!%p162_p10), %s568_s15, 7  ;;  %s188_s27 = scalar_lea.vmem (!%p162_p10), [#allocation2], %s419_s23 }
  0x11   : > { %s340_s28 = sshll.u32 (!%p162_p10), %s188_s27, 4  ;;  %s682_s4 = scalar_lea.hbm (!%p162_p10), %s725_s3, %s426_s26  ;;  %s341_s28 = int_to_ptr.vmem [resolvable:$true] %s340_s28 }
  0x14   : > { %v201_v0 = vld [vmem:[%s723_s1] sm:$0xff]  ;;  %v578_v1 = vmov 0.0   ;;  %v202_v3 = vld [vmem:[%s723_s1 + $0x8] sm:$0xff]  ;;  %s191_s5 = scalar_select %p190_p11, %s568_s15, 1  ;;  %vm579_vm0 = vmmov 0   ;;  %v580_v4 = vmov 0  }
  0x15   : > { %211 = vxpose.xlu0.b32.start [1/4] (short) (narrow) %v201_v0, 8  ;;  %433 = vmatprep.subr.mxu0 %v578_v1  ;;  %v205_v2 = vld [vmem:[%s724_s2] sm:$0xff]  ;;  %vm243_vm1 = vcmask 261120   ;;  %v203_v5 = vld [vmem:[%s723_s1 + $0x10] sm:$0xff]  ;;  %v204_v8 = vld [vmem:[%s723_s1 + $0x18] sm:$0xff]  ;;  %vm323_vm2 = vcmask 130048  }
  0x16   : > { %437 = vmatprep.mubr.msk.f32.mxu0 %vm579_vm0, %v578_v1  ;;  %498 = vset.pattern.permute.xlu1 %v580_v4  ;;  %s429_s6 = sshll.u32 %s191_s5, 4  ;;  %s326_s5 = scalar_lea.sflag [#allocation3], %s186_s21 }
  0x17   : > { %208 = vperm.xlu1 %498, %v205_v2   ;;  %s197_s9 = scalar_lea.vmem %s722_s0, %s429_s6  ;;  %s500_s6 = scalar_lea.vmem %s341_s28, 128 }
  0x18   : > { %v200_v6 = vld [vmem:[%s197_s9 + $0x8] sm:$0xff]  ;;  %v199_v7 = vld [vmem:[%s197_s9] sm:$0xff]  ;;  %p501_p12 = scmp.ne.s32.totalorder %s341_s28, %s500_s6  ;;  %s581_s15 = smov [#allocation2]  }
  0x19   : > { %212 = vxpose.xlu0.b32.cont [2/4] (short) (narrow) %v202_v3, 8  ;;  %434 = vmatpush3.xpose.msk.msra.mxu0 %vm243_vm1, %v200_v6  ;;  %s504_s7 = sshll.u32 %s581_s15, 4  ;;  %s505_s7 = int_to_ptr.vmem [resolvable:$false] %s504_s7 }
  0x1a   : > { %435 = vmatprep.subr.mxu0 %v578_v1  ;;  %p502_p13 = pnand %p501_p12, %p642_p4  ;;  %s506_s8 = scalar_lea.vmem %s505_s7, 256 }
  0x1b   : > { %p507_p1 = scmp.lt.s32.totalorder %s341_s28, %s505_s7  ;;  %p508_p2 = scmp.lt.s32.totalorder %s506_s8, %s500_s6 }
  0x1c   : > { %p503_p0 = pneg %p502_p13 }
  0x1d   : > { %213 = vxpose.xlu0.b32.cont [3/4] (short) (narrow) %v203_v5, 8  ;;  %436 = vmatpush3.xpose.msk.msra.mxu0 %vm243_vm1, %v199_v7  ;;  %p509_p3 = por %p508_p2, %p507_p1 }
  0x1f   : > { %p510_p5 = pnand %p509_p3, %p503_p0 }
  0x21   : > { %214 = vxpose.xlu0.b32.end [4/4] (short) (narrow) %v204_v8, 8 }
  0x4a   : > { %499 = vset.pattern.permute.xlu0 %v580_v4 }
  0x91   : > { %v227_v9 = vpop.trf.xlu0 }
  0x92   : > { %438 = vmatmul.mubr.msk.f32.vlgmr.msra.gmra.mxu0 %vm243_vm1, %v227_v9  ;;  %v209_v10 = vpop.permute.xlu1 %208 }
 0x152   : > { %v319_v11 = vpop.f32.mrf.mxu0 }
 0x153   : > { %v320_v12 = vadd.f32 %v319_v11, %v209_v10 }
 0x154   : > { %v439_v13 = vpop.f32.mrf.mxu0 }
 0x155   : > { %324 = vst.msk [vmem:[%s188_s27] sm:$0xff] %vm323_vm2, %v320_v12 }
 0x156   : > { %513 = shalt.err (!%p510_p5)
}
 0x157   : > { %s514_s9 = scalar_lea.hbm %s682_s4, 128  ;;  %s518_s18 = scalar_lea.hbm %s725_s3, 256 }
 0x158   : > { %p515_p6 = scmp.ne.s32.totalorder %s682_s4, %s514_s9  ;;  %p519_p10 = scmp.lt.s32.totalorder %s682_s4, %s725_s3 }
 0x159   : > { %p520_p11 = scmp.lt.s32.totalorder %s518_s18, %s514_s9 }
 0x15a   : > { %p516_p7 = pnand %p515_p6, %p642_p4 }
 0x15b   : > { %p521_p12 = por %p520_p11, %p519_p10 }
 0x15c   : > { %p517_p9 = pneg %p516_p7 }
 0x15e   : > { %p522_p13 = pnand %p521_p12, %p517_p9 }
 0x160   : > { %525 = shalt.err (!%p522_p13)
}
 0x161   : > { %440 = dma.vmem_to_hbm [thread:$0]  (%p642_p4), %s341_s28, 128, %s682_s4, %s326_s5  }
 0x162 PF: > { %p446_p0 = scmp.ge.s32.totalorder %s576_s17, 2  ;;  %s352_s23 = sand.u32 1, %s556_s12  }
 0x163   : > { %s353_s26 = scalar_lea.sflag [#allocation3], %s352_s23 }
 0x164   : > { %p443_p1 = pnand %p446_p0, %p649_p8 }
 0x166   : > { %p444_p2 = pneg %p443_p1 }
 0x168   : > { %551 = dma.done.wait (%p444_p2), %s353_s26, 128  }
 0x169   : > { %553 = vsyncadd (%p444_p2), %s353_s26, 4294967168  ;;  %s16_s17 = sadd.s32 1, %s576_s17   ;;  %s728_s12 = smov %s560_s13 }
 0x16a   : > { %p13_p3 = scmp.ge.s32.totalorder %s16_s17, 4   ;;  %s729_s13 = smov %s564_s14 }
 0x16b   : > { %s730_s14 = smov %s655_s25  ;;  %s731_s15 = smov %s572_s16 }
 0x16c   : > { %s732_s16 = smov %s734_s20  ;;  %15 = sbr.rel (!%p13_p3) target bundleno = 4 (0x4), region = 67 }
 0x171   :  { %358 = vsyncpa [#allocation3], 1 }
 0x172   :  { %360 = vsyncpa [#allocation3 + $0x1], 1 }

</bundles_post_ra>
